<compile_context>
chip_gen: v5e
topology: v5e:2x2
jax: 0.10.0
libtpu: 0.0.40
codegen_flags: <defaults>
</compile_context>

<pallas_src>
import numpy as np
import jax
import jax.numpy as jnp
from jax.experimental import pallas as pl
from jax.experimental.pallas import tpu as pltpu


def _round_up(x, m):
    return ((x + m - 1) // m) * m


def bag_kernel(x_ref, agg_ref, w1_ref, b1_ref, w2_ref, b2_ref, recip_ref,
               out_ref, acc_ref):
    n = pl.program_id(0)

    @pl.when(n == 0)
    def _init():
        acc_ref[...] = jnp.zeros_like(acc_ref)

    # prepNN on this instance tile: bf16 MXU matmul, f32 accumulation,
    # bias + ReLU in f32 on the VPU.
    h = jnp.dot(x_ref[...], w1_ref[...], preferred_element_type=jnp.float32)
    h = jnp.maximum(h + b1_ref[...], 0.0)

    # Per-bag sum accumulation: 0/1 one-hot membership (B, TN) @ (TN, H).
    # Padded instance columns of the one-hot are zero, so zero-padded rows of
    # x (whose h = relu(b1) != 0) never contribute.
    acc_ref[...] += jnp.dot(agg_ref[...], h.astype(jnp.bfloat16),
                            preferred_element_type=jnp.float32)

    @pl.when(n == pl.num_programs(0) - 1)
    def _finalize():
        # mean = per-bag sum * (1 / count), scaled in f32 (exact one-hot sum).
        pooled = acc_ref[...] * recip_ref[...]
        # afterNN: Linear (bf16 MXU, f32 accumulation) + bias, single
        # lane-dense (B_pad, OUT_pad>=128) store.
        out = jnp.dot(pooled.astype(jnp.bfloat16), w2_ref[...],
                      preferred_element_type=jnp.float32) + b2_ref[...]
        out_ref[...] = out.astype(out_ref.dtype)


def bag_model_forward(x, ids, w1, b1, w2, b2, *, tile_n=512):
    """Reproduces BagModel.forward for the single-level-ids case.

    x   : (N, D) float32 instances (jax array)
    ids : (N,) or (L, N) int bag ids (host numpy array)
    w1, b1 : prepNN Linear(D, H) params; b1 shape (1, H)
    w2, b2 : afterNN Linear(H, OUT) params; b2 shape (1, OUT)
    """
    ids = np.asarray(ids)
    if ids.ndim == 1:
        ids = ids.reshape(1, -1)              # ids.resize_(1, len(ids))
    inner_ids = ids[ids.shape[0] - 1]         # inner_ids = ids[len(ids) - 1]

    N, D = x.shape
    H = w1.shape[1]
    OUT = w2.shape[1]

    # torch.unique(sorted=True, return_inverse, return_counts) + ordering of
    # bags by first appearance -- vectorized (no per-bag Python loops).
    unique, first_idx, inverse, counts = np.unique(
        inner_ids, return_index=True, return_inverse=True, return_counts=True)
    order = np.argsort(first_idx, kind="stable")
    counts = counts[order].astype(np.float32)
    rank = np.empty(len(order), dtype=np.int64)
    rank[order] = np.arange(len(order))
    bag_row = rank[inverse]                   # output row for each instance
    B = len(order)

    # Padded / tiled sizes (MXU- and lane-aligned).
    D_pad = _round_up(D, 128)
    H_pad = _round_up(H, 128)
    OUT_pad = _round_up(OUT, 128)
    B_pad = _round_up(B, 8)
    TN = min(tile_n, _round_up(N, 128))
    N_pad = _round_up(N, TN)
    grid = (N_pad // TN,)

    # 0/1 one-hot membership matrix in bf16 (exactly representable).
    agg = np.zeros((B_pad, N_pad), dtype=np.float32)
    agg[bag_row, np.arange(N)] = 1.0
    agg = jnp.asarray(agg, dtype=jnp.bfloat16)

    # f32 reciprocal counts, applied at finalize (pad bags -> 0).
    recip = np.zeros((B_pad, 1), dtype=np.float32)
    recip[:B, 0] = 1.0 / counts
    recip = jnp.asarray(recip)

    def pad2(a, rows, cols, dtype):
        a = jnp.asarray(a, dtype=jnp.float32)
        a = jnp.pad(a, ((0, rows - a.shape[0]), (0, cols - a.shape[1])))
        return a.astype(dtype)

    x_p = pad2(x, N_pad, D_pad, jnp.bfloat16)
    w1_p = pad2(w1, D_pad, H_pad, jnp.bfloat16)
    b1_p = pad2(jnp.reshape(b1, (1, -1)), 1, H_pad, jnp.float32)
    w2_p = pad2(w2, H_pad, OUT_pad, jnp.bfloat16)
    b2_p = pad2(jnp.reshape(b2, (1, -1)), 1, OUT_pad, jnp.float32)

    out_padded = pl.pallas_call(
        bag_kernel,
        out_shape=jax.ShapeDtypeStruct((B_pad, OUT_pad), jnp.float32),
        grid_spec=pltpu.PrefetchScalarGridSpec(
            num_scalar_prefetch=0,
            grid=grid,
            in_specs=[
                pl.BlockSpec((TN, D_pad), lambda n: (n, 0)),       # x tile (streamed)
                pl.BlockSpec((B_pad, TN), lambda n: (0, n)),       # one-hot tile (streamed)
                pl.BlockSpec((D_pad, H_pad), lambda n: (0, 0)),    # w1 (resident)
                pl.BlockSpec((1, H_pad), lambda n: (0, 0)),        # b1 (resident)
                pl.BlockSpec((H_pad, OUT_pad), lambda n: (0, 0)),  # w2 (resident)
                pl.BlockSpec((1, OUT_pad), lambda n: (0, 0)),      # b2 (resident)
                pl.BlockSpec((B_pad, 1), lambda n: (0, 0)),        # 1/count (resident)
            ],
            out_specs=pl.BlockSpec((B_pad, OUT_pad), lambda n: (0, 0)),
            scratch_shapes=[pltpu.VMEM((B_pad, H_pad), jnp.float32)],
        ),
        compiler_params=pltpu.CompilerParams(
            dimension_semantics=("arbitrary",)),
    )(x_p, agg, w1_p, b1_p, w2_p, b2_p, recip)

    out = out_padded[:B, :OUT]

    # ids.shape[0] == 1 -> return just `output`, as in BagModel.forward.
    # TODO(synk): multi-level ids branch (returning (output, ids[:, mask])) is
    # pure host-side index bookkeeping; omitted since this instantiation uses
    # single-level (1, N) ids.
    return out


if __name__ == "__main__":
    # Small shapes: N=8 instances, D=32 features, H=32 hidden, OUT=1, 3 bags.
    N, D, H, OUT = 8, 32, 32, 1
    key = jax.random.PRNGKey(0)
    k_x, k_w1, k_b1, k_w2, k_b2 = jax.random.split(key, 5)

    x = jax.random.normal(k_x, (N, D), dtype=jnp.float32)
    # deterministic parameter init (synthetic, not a checkpoint)
    w1 = jax.random.normal(k_w1, (D, H), dtype=jnp.float32) * 0.1
    b1 = jax.random.normal(k_b1, (1, H), dtype=jnp.float32) * 0.1
    w2 = jax.random.normal(k_w2, (H, OUT), dtype=jnp.float32) * 0.1
    b2 = jax.random.normal(k_b2, (1, OUT), dtype=jnp.float32) * 0.1

    # bag ids per instance (1D -> reshaped to (1, N) inside forward, as in torch)
    ids = np.array([0, 0, 0, 1, 1, 2, 2, 2], dtype=np.int64)

    out = bag_model_forward(x, ids, w1, b1, w2, b2)
    out = jax.block_until_ready(out)

    # pure f32 numpy reference of the same forward
    xn, w1n, b1n, w2n, b2n = (np.asarray(a) for a in (x, w1, b1, w2, b2))
    h = np.maximum(xn @ w1n + b1n, 0.0)
    pooled = np.stack([h[ids == b].mean(axis=0) for b in (0, 1, 2)], axis=0)
    ref = pooled @ w2n + b2n

    assert out.shape == (3, OUT), out.shape
    # bf16 MXU operands with f32 accumulation -> compare at bf16-level tolerance
    np.testing.assert_allclose(np.asarray(out), ref, rtol=3e-2, atol=3e-2)
    print("KERNEL_OK")
</pallas_src>

<mosaic_0001>
module attributes {stable_mosaic.version = 11 : i64} {
  func.func @bag_kernel(%arg0: i32, %arg1: memref<128x128xbf16, #tpu.memory_space<vmem>>, %arg2: memref<8x128xbf16, #tpu.memory_space<vmem>>, %arg3: memref<128x128xbf16, #tpu.memory_space<vmem>>, %arg4: memref<1x128xf32, #tpu.memory_space<vmem>>, %arg5: memref<128x128xbf16, #tpu.memory_space<vmem>>, %arg6: memref<1x128xf32, #tpu.memory_space<vmem>>, %arg7: memref<8x1xf32, #tpu.memory_space<vmem>>, %arg8: memref<8x128xf32, #tpu.memory_space<vmem>>, %arg9: memref<8x128xf32, #tpu.memory_space<vmem>>) attributes {dimension_semantics = [#tpu.dimension_semantics<arbitrary>], iteration_bounds = array<i64: 1>, scalar_prefetch = 0 : i64, scratch_operands = 1 : i64, tpu.core_type = #tpu.core_type<tc>, window_params = [{transform_indices = @transform_0, window_bounds = array<i64: 128, 128>}, {transform_indices = @transform_1, window_bounds = array<i64: 8, 128>}, {pipeline_mode = #tpu.pipeline_mode<synchronous>, transform_indices = @transform_2, window_bounds = array<i64: 128, 128>}, {pipeline_mode = #tpu.pipeline_mode<synchronous>, transform_indices = @transform_3, window_bounds = array<i64: 1, 128>}, {pipeline_mode = #tpu.pipeline_mode<synchronous>, transform_indices = @transform_4, window_bounds = array<i64: 128, 128>}, {pipeline_mode = #tpu.pipeline_mode<synchronous>, transform_indices = @transform_5, window_bounds = array<i64: 1, 128>}, {pipeline_mode = #tpu.pipeline_mode<synchronous>, transform_indices = @transform_6, window_bounds = array<i64: 8, 1>}, {pipeline_mode = #tpu.pipeline_mode<synchronous>, transform_indices = @transform_7, window_bounds = array<i64: 8, 128>}]} {
    %c0_i32 = arith.constant 0 : i32
    %0 = arith.cmpi eq, %arg0, %c0_i32 : i32
    %1 = arith.extui %0 : i1 to i32
    %c0_i32_0 = arith.constant 0 : i32
    %2 = arith.cmpi ne, %1, %c0_i32_0 : i32
    scf.if %2 {
      %cst_16 = arith.constant 0.000000e+00 : f32
      %20 = vector.broadcast %cst_16 : f32 to vector<8x128xf32>
      %c0_17 = arith.constant 0 : index
      %c0_18 = arith.constant 0 : index
      %21 = vector.load %arg9[%c0_17, %c0_18] : memref<8x128xf32, #tpu.memory_space<vmem>>, vector<8x128xf32>
      tpu.vector_store %arg9[%c0_17, %c0_18], %20 {strides = array<i32>} : memref<8x128xf32, #tpu.memory_space<vmem>>, vector<8x128xf32>,
    } else {
    }
    %c0 = arith.constant 0 : index
    %c0_1 = arith.constant 0 : index
    %3 = vector.load %arg1[%c0, %c0_1] : memref<128x128xbf16, #tpu.memory_space<vmem>>, vector<128x128xbf16>
    %c0_2 = arith.constant 0 : index
    %c0_3 = arith.constant 0 : index
    %4 = vector.load %arg3[%c0_2, %c0_3] : memref<128x128xbf16, #tpu.memory_space<vmem>>, vector<128x128xbf16>
    %cst = arith.constant dense<0.000000e+00> : vector<128x128xf32>
    %5 = tpu.matmul %3, %4, %cst {dimension_numbers = #tpu.dot_dimension_numbers<[1], [0], [0], [1], [0, 0, 1, 1], [], []>} : vector<128x128xbf16>, vector<128x128xbf16>, vector<128x128xf32> -> vector<128x128xf32>
    %c0_4 = arith.constant 0 : index
    %c0_5 = arith.constant 0 : index
    %6 = vector.load %arg4[%c0_4, %c0_5] : memref<1x128xf32, #tpu.memory_space<vmem>>, vector<1x128xf32>
    %7 = vector.broadcast %6 : vector<1x128xf32> to vector<128x128xf32>
    %8 = arith.addf %5, %7 : vector<128x128xf32>
    %cst_6 = arith.constant 0.000000e+00 : f32
    %9 = vector.broadcast %cst_6 : f32 to vector<128x128xf32>
    %10 = arith.maximumf %8, %9 : vector<128x128xf32>
    %c0_7 = arith.constant 0 : index
    %c0_8 = arith.constant 0 : index
    %11 = vector.load %arg9[%c0_7, %c0_8] : memref<8x128xf32, #tpu.memory_space<vmem>>, vector<8x128xf32>
    %c0_9 = arith.constant 0 : index
    %c0_10 = arith.constant 0 : index
    %12 = vector.load %arg2[%c0_9, %c0_10] : memref<8x128xbf16, #tpu.memory_space<vmem>>, vector<8x128xbf16>
    %13 = arith.truncf %10 : vector<128x128xf32> to vector<128x128xbf16>
    %cst_11 = arith.constant dense<0.000000e+00> : vector<8x128xf32>
    %14 = tpu.matmul %12, %13, %cst_11 {dimension_numbers = #tpu.dot_dimension_numbers<[1], [0], [0], [1], [0, 0, 1, 1], [], []>} : vector<8x128xbf16>, vector<128x128xbf16>, vector<8x128xf32> -> vector<8x128xf32>
    %15 = arith.addf %11, %14 : vector<8x128xf32>
    %c0_12 = arith.constant 0 : index
    %c0_13 = arith.constant 0 : index
    %16 = vector.load %arg9[%c0_12, %c0_13] : memref<8x128xf32, #tpu.memory_space<vmem>>, vector<8x128xf32>
    tpu.vector_store %arg9[%c0_12, %c0_13], %15 {strides = array<i32>} : memref<8x128xf32, #tpu.memory_space<vmem>>, vector<8x128xf32>,
    %c0_i32_14 = arith.constant 0 : i32
    %17 = arith.cmpi eq, %arg0, %c0_i32_14 : i32
    %18 = arith.extui %17 : i1 to i32
    %c0_i32_15 = arith.constant 0 : i32
    %19 = arith.cmpi ne, %18, %c0_i32_15 : i32
    scf.if %19 {
      %c0_16 = arith.constant 0 : index
      %c0_17 = arith.constant 0 : index
      %20 = vector.load %arg9[%c0_16, %c0_17] : memref<8x128xf32, #tpu.memory_space<vmem>>, vector<8x128xf32>
      %c0_18 = arith.constant 0 : index
      %c0_19 = arith.constant 0 : index
      %21 = vector.load %arg7[%c0_18, %c0_19] : memref<8x1xf32, #tpu.memory_space<vmem>>, vector<8x1xf32>
      %22 = vector.broadcast %21 : vector<8x1xf32> to vector<8x128xf32>
      %23 = arith.mulf %20, %22 : vector<8x128xf32>
      %24 = arith.truncf %23 : vector<8x128xf32> to vector<8x128xbf16>
      %c0_20 = arith.constant 0 : index
      %c0_21 = arith.constant 0 : index
      %25 = vector.load %arg5[%c0_20, %c0_21] : memref<128x128xbf16, #tpu.memory_space<vmem>>, vector<128x128xbf16>
      %cst_22 = arith.constant dense<0.000000e+00> : vector<8x128xf32>
      %26 = tpu.matmul %24, %25, %cst_22 {dimension_numbers = #tpu.dot_dimension_numbers<[1], [0], [0], [1], [0, 0, 1, 1], [], []>} : vector<8x128xbf16>, vector<128x128xbf16>, vector<8x128xf32> -> vector<8x128xf32>
      %c0_23 = arith.constant 0 : index
      %c0_24 = arith.constant 0 : index
      %27 = vector.load %arg6[%c0_23, %c0_24] : memref<1x128xf32, #tpu.memory_space<vmem>>, vector<1x128xf32>
      %28 = vector.broadcast %27 : vector<1x128xf32> to vector<8x128xf32>
      %29 = arith.addf %26, %28 : vector<8x128xf32>
      %c0_25 = arith.constant 0 : index
      %c0_26 = arith.constant 0 : index
      %30 = vector.load %arg8[%c0_25, %c0_26] : memref<8x128xf32, #tpu.memory_space<vmem>>, vector<8x128xf32>
      tpu.vector_store %arg8[%c0_25, %c0_26], %29 {strides = array<i32>} : memref<8x128xf32, #tpu.memory_space<vmem>>, vector<8x128xf32>,
    } else {
    }
    return
  }
  func.func @transform_0(%arg0: i32) -> (i32, i32) {
    %c0_i32 = arith.constant 0 : i32
    %c0_i32_0 = arith.constant 0 : i32
    return %arg0, %c0_i32 : i32, i32
  }
  func.func @transform_1(%arg0: i32) -> (i32, i32) {
    %c0_i32 = arith.constant 0 : i32
    %c0_i32_0 = arith.constant 0 : i32
    return %c0_i32, %arg0 : i32, i32
  }
  func.func @transform_2(%arg0: i32) -> (i32, i32) {
    %c0_i32 = arith.constant 0 : i32
    %c0_i32_0 = arith.constant 0 : i32
    %c0_i32_1 = arith.constant 0 : i32
    return %c0_i32, %c0_i32_0 : i32, i32
  }
  func.func @transform_3(%arg0: i32) -> (i32, i32) {
    %c0_i32 = arith.constant 0 : i32
    %c0_i32_0 = arith.constant 0 : i32
    %c0_i32_1 = arith.constant 0 : i32
    return %c0_i32, %c0_i32_0 : i32, i32
  }
  func.func @transform_4(%arg0: i32) -> (i32, i32) {
    %c0_i32 = arith.constant 0 : i32
    %c0_i32_0 = arith.constant 0 : i32
    %c0_i32_1 = arith.constant 0 : i32
    return %c0_i32, %c0_i32_0 : i32, i32
  }
  func.func @transform_5(%arg0: i32) -> (i32, i32) {
    %c0_i32 = arith.constant 0 : i32
    %c0_i32_0 = arith.constant 0 : i32
    %c0_i32_1 = arith.constant 0 : i32
    return %c0_i32, %c0_i32_0 : i32, i32
  }
  func.func @transform_6(%arg0: i32) -> (i32, i32) {
    %c0_i32 = arith.constant 0 : i32
    %c0_i32_0 = arith.constant 0 : i32
    %c0_i32_1 = arith.constant 0 : i32
    return %c0_i32, %c0_i32_0 : i32, i32
  }
  func.func @transform_7(%arg0: i32) -> (i32, i32) {
    %c0_i32 = arith.constant 0 : i32
    %c0_i32_0 = arith.constant 0 : i32
    %c0_i32_1 = arith.constant 0 : i32
    return %c0_i32, %c0_i32_0 : i32, i32
  }
}

</mosaic_0001>

<bundles_post_ra>
// kernel: tpu_custom_call.1
= control target key start
LH: loop header
LB: loop body
LE: loop exit
PB: predicated region body
PF: predicated region fallthrough
CT: control target
= control target key end

     0   :  { %12 = vsyncpa [#allocation4], 0  ;;  %s738_s0 = inlined_call_operand.hbm [shape: bf16[128,128], index: 0, kind: input, shape index: {}]   ;;  %s739_s1 = inlined_call_operand.vmem [shape: bf16[8,128], index: 1, kind: input, shape index: {}]   ;;  %s740_s2 = inlined_call_operand.hbm [shape: bf16[128,128], index: 2, kind: input, shape index: {}]   ;;  %s741_s3 = inlined_call_operand.vmem [shape: f32[1,128], index: 3, kind: input, shape index: {}]   ;;  %s742_s4 = inlined_call_operand.hbm [shape: bf16[128,128], index: 4, kind: input, shape index: {}]   ;;  %s743_s5 = inlined_call_operand.vmem [shape: f32[1,128], index: 5, kind: input, shape index: {}]   ;;  %s744_s6 = inlined_call_operand.vmem [shape: f32[8,1], index: 6, kind: input, shape index: {}]   ;;  %s745_s7 = inlined_call_operand.hbm [shape: f32[8,128], index: 7, kind: output, shape index: {}]  }
   0x1   :  { %13 = vsyncpa [#allocation7], 0 }
   0x2   :  { %14 = vsyncpa [#allocation5], 0  ;;  %s34_s26 = sshll.u32 %s740_s2, 4  ;;  %s661_s27 = smov [#allocation6]   ;;  %s35_s26 = int_to_ptr.hbm [resolvable:$true] %s34_s26 }
   0x3   :  { %s36_s28 = sshll.u32 %s661_s27, 4  ;;  %s19_s8 = sshll.u32 %s738_s0, 4  ;;  %s37_s28 = int_to_ptr.vmem [resolvable:$true] %s36_s28  ;;  %s20_s8 = int_to_ptr.hbm [resolvable:$true] %s19_s8 }
   0x4   :  { %s662_s9 = smov 64   ;;  %s663_s10 = smov 4  }
   0x5   :  { %42 = dma.hbm_to_vmem [thread:$0]  %s35_s26, 1024, %s37_s28, [#allocation7], %s662_s9, %s662_s9, %s663_s10  }
   0x6   :  { %s664_s11 = smov [#allocation3]   ;;  %s49_s15 = sshll.u32 %s742_s4, 4  ;;  %s50_s15 = int_to_ptr.hbm [resolvable:$true] %s49_s15 }
   0x7   :  { %s21_s12 = sshll.u32 %s664_s11, 4  ;;  %s665_s2 = smov [#allocation8]   ;;  %s22_s12 = int_to_ptr.vmem [resolvable:$true] %s21_s12 }
   0x8   :  { %27 = dma.hbm_to_vmem [thread:$0]  %s20_s8, 1024, %s22_s12, [#allocation4], %s662_s9, %s662_s9, %s663_s10  }
   0x9   :  { %s51_s16 = sshll.u32 %s665_s2, 4  ;;  %s52_s16 = int_to_ptr.vmem [resolvable:$true] %s51_s16 }
   0xa   :  { %57 = dma.hbm_to_vmem [thread:$0]  %s50_s15, 1024, %s52_s16, [#allocation7], %s662_s9, %s662_s9, %s663_s10  }
   0xb   :  { %655 = dma.done.wait [#allocation4], 1024  }
   0xc   :  { %656 = vsyncadd [#allocation4], 4294966272 }
   0xd   :  { %657 = dma.done.wait [#allocation7], 2048  }
   0xe   :  { %658 = vsyncadd [#allocation7], 4294965248  ;;  %v524_v0 = vld [vmem:[#allocation6 + $0x38] sm:$0xff]  ;;  %v523_v1 = vld [vmem:[#allocation6 + $0x30] sm:$0xff]  ;;  %v666_v45 = vmov 0   ;;  %s667_s21 = smov [#allocation9]  }
   0xf   :  { %534 = vmatpush.bf16.msra.mxu3 %v524_v0  ;;  %211 = vmatpush.bf16.msra.mxu0 %v524_v0  ;;  %v522_v2 = vld [vmem:[#allocation6 + $0x28] sm:$0xff]  ;;  %v521_v3 = vld [vmem:[#allocation6 + $0x20] sm:$0xff]  ;;  %v520_v4 = vld [vmem:[#allocation6 + $0x18] sm:$0xff]  ;;  %s400_s22 = sshll.u32 %s667_s21, 4  ;;  %s402_s25 = sshll.u32 %s745_s7, 4  ;;  %s401_s22 = int_to_ptr.vmem [resolvable:$true] %s400_s22  ;;  %s403_s25 = int_to_ptr.hbm [resolvable:$true] %s402_s25 }
  0x10   :  { %533 = vmatpush.bf16.msra.mxu1 %v524_v0  ;;  %v519_v5 = vld [vmem:[#allocation6 + $0x10] sm:$0xff]  ;;  %v518_v6 = vld [vmem:[#allocation6 + $0x8] sm:$0xff]  ;;  %v517_v7 = vld [vmem:[#allocation6] sm:$0xff]  ;;  %556 = vset.pattern.permute.xlu0 %v666_v45 }
  0x11   :  { %v514_v8 = vld [vmem:[#allocation3 + $0x28] sm:$0xff]  ;;  %v509_v9 = vld [vmem:[#allocation3] sm:$0xff]  ;;  %v512_v10 = vld [vmem:[#allocation3 + $0x18] sm:$0xff] }
  0x12   :  { %v515_v11 = vld [vmem:[#allocation3 + $0x30] sm:$0xff]  ;;  %v510_v12 = vld [vmem:[#allocation3 + $0x8] sm:$0xff]  ;;  %v513_v13 = vld [vmem:[#allocation3 + $0x20] sm:$0xff] }
  0x13   :  { %536 = vmatpush.bf16.msra.mxu3 %v523_v1  ;;  %212 = vmatpush.bf16.msra.mxu0 %v523_v1  ;;  %v516_v14 = vld [vmem:[#allocation3 + $0x38] sm:$0xff]  ;;  %v511_v15 = vld [vmem:[#allocation3 + $0x10] sm:$0xff]  ;;  %v557_v28 = vld [vmem:[%s741_s3] ss:$0 sm:$0xff] }
  0x14   :  { %535 = vmatpush.bf16.msra.mxu1 %v523_v1  ;;  %v305_v41 = vld [vmem:[%s744_s6] sm:$0xff]  ;;  %v532_v42 = vld [vmem:[#allocation8 + $0x38] sm:$0xff]  ;;  %v531_v46 = vld [vmem:[#allocation8 + $0x30] sm:$0xff] }
  0x15   :  { %308 = vperm.xlu0 %556, %v305_v41   ;;  %381 = vmatpush.bf16.msra.mxu2 %v532_v42  ;;  %v530_v54 = vld [vmem:[#allocation8 + $0x28] sm:$0xff]  ;;  %v529_v61 = vld [vmem:[#allocation8 + $0x20] sm:$0xff] }
  0x17   :  { %538 = vmatpush.bf16.msra.mxu3 %v522_v2  ;;  %213 = vmatpush.bf16.msra.mxu0 %v522_v2 }
  0x18   :  { %537 = vmatpush.bf16.msra.mxu1 %v522_v2  ;;  %v528_v2 = vld [vmem:[#allocation8 + $0x18] sm:$0xff] }
  0x19   :  { %382 = vmatpush.bf16.msra.mxu2 %v531_v46 }
  0x1b   :  { %540 = vmatpush.bf16.msra.mxu3 %v521_v3  ;;  %214 = vmatpush.bf16.msra.mxu0 %v521_v3 }
  0x1c   :  { %539 = vmatpush.bf16.msra.mxu1 %v521_v3 }
  0x1d   :  { %383 = vmatpush.bf16.msra.mxu2 %v530_v54 }
  0x1f   :  { %542 = vmatpush.bf16.msra.mxu3 %v520_v4  ;;  %215 = vmatpush.bf16.msra.mxu0 %v520_v4 }
  0x20   :  { %541 = vmatpush.bf16.msra.mxu1 %v520_v4 }
  0x21   :  { %384 = vmatpush.bf16.msra.mxu2 %v529_v61 }
  0x23   :  { %544 = vmatpush.bf16.msra.mxu3 %v519_v5  ;;  %216 = vmatpush.bf16.msra.mxu0 %v519_v5 }
  0x24   :  { %543 = vmatpush.bf16.msra.mxu1 %v519_v5 }
  0x25   :  { %385 = vmatpush.bf16.msra.mxu2 %v528_v2 }
  0x27   :  { %546 = vmatpush.bf16.msra.mxu3 %v518_v6  ;;  %217 = vmatpush.bf16.msra.mxu0 %v518_v6 }
  0x28   :  { %545 = vmatpush.bf16.msra.mxu1 %v518_v6 }
  0x2b   :  { %548 = vmatpush.bf16.msra.mxu3 %v517_v7  ;;  %218 = vmatpush.bf16.msra.mxu0 %v517_v7 }
  0x2c   :  { %547 = vmatpush.bf16.msra.mxu1 %v517_v7 }
  0x2e   :  { %244 = vmatmul.bf16.vlgmr.msra.gmra.mxu3 %v514_v8  ;;  %219 = vmatmul.bf16.vlgmr.msra.gmra.mxu0 %v509_v9  ;;  %v527_v8 = vld [vmem:[#allocation8 + $0x10] sm:$0xff] }
  0x2f   :  { %234 = vmatmul.bf16.vlgmr.msra.gmra.mxu1 %v512_v10  ;;  %386 = vmatpush.bf16.msra.mxu2 %v527_v8 }
  0x3e   :  { %249 = vmatmul.bf16.gmra.mxu3 %v515_v11  ;;  %224 = vmatmul.bf16.gmra.mxu0 %v510_v12 }
  0x3f   :  { %239 = vmatmul.bf16.gmra.mxu1 %v513_v13  ;;  %v526_v13 = vld [vmem:[#allocation8 + $0x8] sm:$0xff] }
  0x40   :  { %387 = vmatpush.bf16.msra.mxu2 %v526_v13 }
  0x4e   :  { %254 = vmatmul.bf16.gmra.mxu3 %v516_v14  ;;  %229 = vmatmul.bf16.gmra.mxu0 %v511_v15 }
  0xab   :  { %v717_v17 = vpop.f32.mrf.mxu0 }
  0xac   :  { %v235_v21 = vpop.f32.mrf.mxu1  ;;  %v221_v7 = vadd.f32 %v557_v28, %v717_v17  ;;  %v277_v17 = vld [vmem:[%s739_s1] sm:$0xf] }
  0xad   :  { %v236_v52 = vadd.f32 %v557_v28, %v235_v21 }
  0xae   :  { %v260_v14 = vmax.f32 %v221_v7, 0.0 }
  0xaf   :  { %v266_v59 = vmax.f32 %v236_v52, 0.0 }
  0xb1   :  { %v245_v16 = vpop.f32.mrf.mxu3 }
  0xb2   :  { %v246_v43 = vadd.f32 %v557_v28, %v245_v16 }
  0xb3   :  { %v719_v19 = vpop.f32.mrf.mxu0 }
  0xb4   :  { %v237_v24 = vpop.f32.mrf.mxu1  ;;  %v270_v51 = vmax.f32 %v246_v43, 0.0  ;;  %v223_v9 = vadd.f32 %v557_v28, %v719_v19  ;;  %v309_v19 = vpop.permute.xlu0 %308 }
  0xb5   :  { %v238_v53 = vadd.f32 %v557_v28, %v237_v24 }
  0xb6   :  { %v261_v15 = vmax.f32 %v223_v9, 0.0 }
  0xb7   :  { %v267_v60 = vmax.f32 %v238_v53, 0.0 }
  0xb9   :  { %v247_v18 = vpop.f32.mrf.mxu3  ;;  %v281_v1 = vpack.c.bf16 %v267_v60, %v266_v59 }
  0xba   :  { %v248_v37 = vadd.f32 %v557_v28, %v247_v18  ;;  %v278_v18 = vpack.c.bf16 %v261_v15, %v260_v14 }
  0xbb   :  { %v225_v23 = vpop.f32.mrf.mxu0 }
  0xbc   :  { %v240_v27 = vpop.f32.mrf.mxu1  ;;  %v271_v47 = vmax.f32 %v248_v37, 0.0  ;;  %v226_v3 = vadd.f32 %v557_v28, %v225_v23 }
  0xbd   :  { %v241_v48 = vadd.f32 %v557_v28, %v240_v27 }
  0xbe   :  { %v283_v57 = vpack.c.bf16 %v271_v47, %v270_v51  ;;  %v262_v10 = vmax.f32 %v226_v3, 0.0 }
  0xbf   :  { %v268_v55 = vmax.f32 %v241_v48, 0.0 }
  0xc1   :  { %v250_v20 = vpop.f32.mrf.mxu3 }
  0xc2   :  { %v251_v33 = vadd.f32 %v557_v28, %v250_v20  ;;  %v525_v20 = vld [vmem:[#allocation8] sm:$0xff] }
  0xc3   :  { %v227_v26 = vpop.f32.mrf.mxu0  ;;  %388 = vmatpush.bf16.msra.mxu2 %v525_v20 }
  0xc4   :  { %v242_v40 = vpop.f32.mrf.mxu1  ;;  %v272_v44 = vmax.f32 %v251_v33, 0.0  ;;  %v228_v4 = vadd.f32 %v557_v28, %v227_v26 }
  0xc5   :  { %v243_v49 = vadd.f32 %v557_v28, %v242_v40 }
  0xc6   :  { %v263_v11 = vmax.f32 %v228_v4, 0.0 }
  0xc7   :  { %v269_v56 = vmax.f32 %v243_v49, 0.0 }
  0xc8   :  { %v279_v16 = vpack.c.bf16 %v263_v11, %v262_v10 }
  0xc9   :  { %v252_v22 = vpop.f32.mrf.mxu3  ;;  %v282_v0 = vpack.c.bf16 %v269_v56, %v268_v55 }
  0xca   :  { %v253_v31 = vadd.f32 %v557_v28, %v252_v22 }
  0xcb   :  { %v230_v36 = vpop.f32.mrf.mxu0 }
  0xcc   :  { %v273_v38 = vmax.f32 %v253_v31, 0.0  ;;  %v231_v62 = vadd.f32 %v557_v28, %v230_v36 }
  0xce   :  { %v284_v50 = vpack.c.bf16 %v273_v38, %v272_v44  ;;  %v264_v5 = vmax.f32 %v231_v62, 0.0 }
  0xd1   :  { %v255_v25 = vpop.f32.mrf.mxu3 }
  0xd2   :  { %v256_v29 = vadd.f32 %v557_v28, %v255_v25  ;;  %v558_v25 = vld [vmem:[%s743_s5] ss:$0 sm:$0xff] }
  0xd3   :  { %v232_v58 = vpop.f32.mrf.mxu0 }
  0xd4   :  { %v274_v34 = vmax.f32 %v256_v29, 0.0  ;;  %v233_v63 = vadd.f32 %v557_v28, %v232_v58 }
  0xd6   :  { %v265_v6 = vmax.f32 %v233_v63, 0.0 }
  0xd8   :  { %v280_v12 = vpack.c.bf16 %v265_v6, %v264_v5 }
  0xd9   :  { %v257_v30 = vpop.f32.mrf.mxu3 }
  0xda   :  { %v258_v32 = vadd.f32 %v557_v28, %v257_v30 }
  0xdc   :  { %v275_v35 = vmax.f32 %v258_v32, 0.0 }
  0xde   :  { %v285_v39 = vpack.c.bf16 %v275_v35, %v274_v34 }
  0xe0   :  { %286 = vmatpush.bf16.msrb.mxu1 %v285_v39 }
  0xe4   :  { %287 = vmatpush.bf16.msrb.mxu1 %v284_v50 }
  0xe8   :  { %288 = vmatpush.bf16.msrb.mxu1 %v283_v57 }
  0xec   :  { %289 = vmatpush.bf16.msrb.mxu1 %v282_v0 }
  0xf0   :  { %290 = vmatpush.bf16.msrb.mxu1 %v281_v1 }
  0xf4   :  { %291 = vmatpush.bf16.msrb.mxu1 %v280_v12 }
  0xf8   :  { %292 = vmatpush.bf16.msrb.mxu1 %v279_v16 }
  0xfc   :  { %293 = vmatpush.bf16.msrb.mxu1 %v278_v18 }
  0xff   :  { %294 = vmatmul.bf16.vlgmr.msrb.gmra.mxu1 %v277_v17 }
 0x17c   :  { %v295_v21 = vpop.f32.mrf.mxu1 }
 0x17d   :  { %v311_v22 = vmul.f32 %v309_v19, %v295_v21 }
 0x17f   :  { %v312_v23 = vpack.c.bf16 %v311_v22, %v311_v22 }
 0x181   :  { %389 = vmatmul.bf16.vlgmr.msra.gmra.mxu2 %v312_v23 }
 0x184   :  { %v297_v24 = vpop.f32.mrf.mxu1 }
 0x204   :  { %v390_v26 = vpop.f32.mrf.mxu2 }
 0x205   :  { %v391_v27 = vadd.f32 %v558_v25, %v390_v26 }
 0x207   :  { %394 = vst [vmem:[#allocation9] sm:$0xff] %v391_v27 }
 0x208   :  { %405 = dma.vmem_to_hbm [thread:$0]  %s401_s22, 128, %s403_s25, [#allocation5]  }
 0x20c   :  { %v392_v28 = vpop.f32.mrf.mxu2 }
 0x20d   :  { %659 = dma.done.wait [#allocation5], 128  }
 0x20e   :  { %660 = vsyncadd [#allocation5], 4294967168 }
 0x20f   :  { %410 = vsyncpa [#allocation4], 1 }
 0x210   :  { %411 = vsyncpa [#allocation7], 1 }
 0x211   :  { %412 = vsyncpa [#allocation5], 1 }

</bundles_post_ra>
